<compile_context>
chip_gen: v6e
topology: v6e:2x2x1
jax: 0.10.0
libtpu: 0.0.40
codegen_flags: <defaults>
</compile_context>

<pallas_src>
import functools

import jax
import jax.numpy as jnp
from jax.experimental import pallas as pl
from jax.experimental.pallas import tpu as pltpu


def _mlp_arena2d_kernel(x_ref, w1_ref, b1_ref, w2_ref, b2_ref,
                        wp_ref, bp_ref, wv_ref, bv_ref, pi_ref, vf_ref):
    """One TB-row batch tile: body net + policy / value heads, ReLU everywhere."""
    # Cast x to the weight dtype inside the kernel (no extra HBM pass over x).
    x = x_ref[...].astype(w1_ref.dtype)

    # body_net: Linear(F, 64) + ReLU, Linear(64, 64) + ReLU  (f32 accumulation)
    h1 = jnp.dot(x, w1_ref[...], preferred_element_type=jnp.float32) + b1_ref[...]
    h1 = jnp.maximum(h1, 0.0)
    h2 = jnp.dot(h1.astype(w2_ref.dtype), w2_ref[...],
                 preferred_element_type=jnp.float32) + b2_ref[...]
    h2 = jnp.maximum(h2, 0.0)
    h2c = h2.astype(wp_ref.dtype)

    # policy_net: Linear(64, pi_dim) + ReLU  -> separate output stream
    pi = jnp.dot(h2c, wp_ref[...], preferred_element_type=jnp.float32) + bp_ref[...]
    pi_ref[...] = jnp.maximum(pi, 0.0).astype(pi_ref.dtype)

    # value_net: Linear(64, vf_dim) + ReLU  -> separate output stream
    vf = jnp.dot(h2c, wv_ref[...], preferred_element_type=jnp.float32) + bv_ref[...]
    vf_ref[...] = jnp.maximum(vf, 0.0).astype(vf_ref.dtype)


def _round_up(x, m):
    return ((x + m - 1) // m) * m


@functools.partial(jax.jit,
                   static_argnames=("tile_b", "compute_dtype", "out_dtype"))
def mlp_arena2d_forward(features, params, *, tile_b=2048,
                        compute_dtype=jnp.float32, out_dtype=jnp.float32):
    """features: [B, F] float32. params: dict of weights/biases (see init_params).

    Returns (pi, vf) with shapes [B, pi_dim], [B, vf_dim] (out_dtype).
    """
    B, F = features.shape
    pi_dim = params["wp"].shape[1]
    vf_dim = params["wv"].shape[1]

    # ---- Batch tiling: TB rows per step (multiple of 8 sublanes). ----------
    # Large tile amortizes the ~0.35 us per-step cost, but cap it so the grid
    # keeps >= MIN_STEPS steps (keeps both v7x TensorCores busy).
    MIN_STEPS = 8
    tb_cap = max(8, _round_up(pl.cdiv(B, MIN_STEPS), 8))
    TB = max(8, min(_round_up(int(tile_b), 8), tb_cap))
    grid = (pl.cdiv(B, TB),)   # ragged last block masked by Pallas (no jnp.pad)

    # Only the tiny weights change dtype (one-time, a few KiB); x stays as-is
    # in HBM and is cast in-kernel.  Biases stay f32 (added to f32 accumulator).
    cd = compute_dtype
    w1 = params["w1"].astype(cd)
    w2 = params["w2"].astype(cd)
    wp = params["wp"].astype(cd)
    wv = params["wv"].astype(cd)
    b1 = params["b1"].astype(jnp.float32)
    b2 = params["b2"].astype(jnp.float32)
    bp = params["bp"].astype(jnp.float32)
    bv = params["bv"].astype(jnp.float32)

    def resident(arr):  # same block every step -> stays VMEM-resident
        return pl.BlockSpec(arr.shape, lambda i: (0, 0))

    in_specs = [
        pl.BlockSpec((TB, F), lambda i: (i, 0)),   # x tile streams over batch
        resident(w1), resident(b1),
        resident(w2), resident(b2),
        resident(wp), resident(bp),
        resident(wv), resident(bv),
    ]
    out_specs = (
        pl.BlockSpec((TB, pi_dim), lambda i: (i, 0)),
        pl.BlockSpec((TB, vf_dim), lambda i: (i, 0)),
    )
    out_shape = (
        jax.ShapeDtypeStruct((B, pi_dim), out_dtype),
        jax.ShapeDtypeStruct((B, vf_dim), out_dtype),
    )

    w_bytes = jnp.dtype(cd).itemsize
    o_bytes = jnp.dtype(out_dtype).itemsize
    x_bytes = jnp.dtype(features.dtype).itemsize
    cost = pl.CostEstimate(
        flops=2 * B * (F * 64 + 64 * 64 + 64 * (pi_dim + vf_dim)),
        transcendentals=0,
        bytes_accessed=(B * F * x_bytes                                 # x
                        + B * (pi_dim + vf_dim) * o_bytes               # pi|vf
                        + (F * 64 + 64 * 64 + 64 * (pi_dim + vf_dim)) * w_bytes
                        + (64 + 64 + pi_dim + vf_dim) * 4),             # biases
    )

    pi, vf = pl.pallas_call(
        _mlp_arena2d_kernel,
        out_shape=out_shape,
        grid=grid,
        in_specs=in_specs,
        out_specs=out_specs,
        compiler_params=pltpu.CompilerParams(
            dimension_semantics=("parallel",),  # shard batch axis across TCs (v7x)
        ),
        cost_estimate=cost,
    )(features, w1, b1, w2, b2, wp, bp, wv, bv)

    return pi, vf


def init_params(key, feature_dim, last_layer_dim_pi=32, last_layer_dim_vf=32):
    """Deterministic synthetic init (uniform, PyTorch-Linear-like fan-in scale).

    Weights stored as [in_dim, out_dim] so the kernel computes y = x @ W + b.
    """
    ks = jax.random.split(key, 8)

    def linear(kw, kb, fan_in, fan_out):
        bound = 1.0 / jnp.sqrt(float(fan_in))
        w = jax.random.uniform(kw, (fan_in, fan_out), jnp.float32, -bound, bound)
        b = jax.random.uniform(kb, (1, fan_out), jnp.float32, -bound, bound)
        return w, b

    w1, b1 = linear(ks[0], ks[1], feature_dim, 64)
    w2, b2 = linear(ks[2], ks[3], 64, 64)
    wp, bp = linear(ks[4], ks[5], 64, last_layer_dim_pi)
    wv, bv = linear(ks[6], ks[7], 64, last_layer_dim_vf)
    return dict(w1=w1, b1=b1, w2=w2, b2=b2, wp=wp, bp=bp, wv=wv, bv=bv)


def _reference(features, p):
    h1 = jnp.maximum(features @ p["w1"] + p["b1"], 0.0)
    h2 = jnp.maximum(h1 @ p["w2"] + p["b2"], 0.0)
    pi = jnp.maximum(h2 @ p["wp"] + p["bp"], 0.0)
    vf = jnp.maximum(h2 @ p["wv"] + p["bv"], 0.0)
    return pi, vf


if __name__ == "__main__":
    key = jax.random.PRNGKey(0)
    k_x, k_p = jax.random.split(key)

    batch = 2
    feature_dim = 32
    features = jax.random.normal(k_x, (batch, feature_dim), jnp.float32)
    params = init_params(k_p, feature_dim, last_layer_dim_pi=32, last_layer_dim_vf=32)

    # Exact-semantics run (f32 compute, f32 outputs), tiny batch -> single
    # ragged grid step (TB=8 block over 2 rows).
    pi, vf = jax.block_until_ready(mlp_arena2d_forward(features, params))
    pi_ref, vf_ref = _reference(features, params)
    assert pi.shape == (batch, 32) and vf.shape == (batch, 32)
    assert jnp.allclose(pi, pi_ref, atol=1e-5, rtol=1e-5)
    assert jnp.allclose(vf, vf_ref, atol=1e-5, rtol=1e-5)

    # Larger batch exercises the batch-tiled grid with a ragged last block
    # (B=1000 not a multiple of TB) and multiple grid steps.
    big_B = 1000
    big_x = jax.random.normal(jax.random.PRNGKey(1), (big_B, feature_dim), jnp.float32)
    pi_b, vf_b = jax.block_until_ready(mlp_arena2d_forward(big_x, params))
    pi_b_ref, vf_b_ref = _reference(big_x, params)
    assert pi_b.shape == (big_B, 32) and vf_b.shape == (big_B, 32)
    assert jnp.allclose(pi_b, pi_b_ref, atol=1e-4, rtol=1e-4)
    assert jnp.allclose(vf_b, vf_b_ref, atol=1e-4, rtol=1e-4)

    # Optional reduced-precision path (bf16 weights + bf16 output stores) for
    # the mem-bound win on v5e/v6e/v7x; looser tolerance by design.
    pi_h, vf_h = jax.block_until_ready(
        mlp_arena2d_forward(big_x, params,
                            compute_dtype=jnp.bfloat16, out_dtype=jnp.bfloat16))
    assert jnp.allclose(pi_h.astype(jnp.float32), pi_b_ref, atol=5e-2, rtol=5e-2)
    assert jnp.allclose(vf_h.astype(jnp.float32), vf_b_ref, atol=5e-2, rtol=5e-2)

    print("KERNEL_OK")
</pallas_src>

<mosaic_0001>
module attributes {stable_mosaic.version = 11 : i64} {
  func.func @_mlp_arena2d_kernel(%arg0: i32, %arg1: memref<8x32xf32, #tpu.memory_space<vmem>>, %arg2: memref<32x64xf32, #tpu.memory_space<vmem>>, %arg3: memref<1x64xf32, #tpu.memory_space<vmem>>, %arg4: memref<64x64xf32, #tpu.memory_space<vmem>>, %arg5: memref<1x64xf32, #tpu.memory_space<vmem>>, %arg6: memref<64x32xf32, #tpu.memory_space<vmem>>, %arg7: memref<1x32xf32, #tpu.memory_space<vmem>>, %arg8: memref<64x32xf32, #tpu.memory_space<vmem>>, %arg9: memref<1x32xf32, #tpu.memory_space<vmem>>, %arg10: memref<8x32xf32, #tpu.memory_space<vmem>>, %arg11: memref<8x32xf32, #tpu.memory_space<vmem>>) attributes {dimension_semantics = [#tpu.dimension_semantics<parallel>], iteration_bounds = array<i64: 1>, scalar_prefetch = 0 : i64, scratch_operands = 0 : i64, tpu.core_type = #tpu.core_type<tc>, window_params = [{transform_indices = @transform_0, window_bounds = array<i64: 8, 32>}, {pipeline_mode = #tpu.pipeline_mode<synchronous>, transform_indices = @transform_1, window_bounds = array<i64: 32, 64>}, {pipeline_mode = #tpu.pipeline_mode<synchronous>, transform_indices = @transform_2, window_bounds = array<i64: 1, 64>}, {pipeline_mode = #tpu.pipeline_mode<synchronous>, transform_indices = @transform_3, window_bounds = array<i64: 64, 64>}, {pipeline_mode = #tpu.pipeline_mode<synchronous>, transform_indices = @transform_4, window_bounds = array<i64: 1, 64>}, {pipeline_mode = #tpu.pipeline_mode<synchronous>, transform_indices = @transform_5, window_bounds = array<i64: 64, 32>}, {pipeline_mode = #tpu.pipeline_mode<synchronous>, transform_indices = @transform_6, window_bounds = array<i64: 1, 32>}, {pipeline_mode = #tpu.pipeline_mode<synchronous>, transform_indices = @transform_7, window_bounds = array<i64: 64, 32>}, {pipeline_mode = #tpu.pipeline_mode<synchronous>, transform_indices = @transform_8, window_bounds = array<i64: 1, 32>}, {transform_indices = @transform_9, window_bounds = array<i64: 8, 32>}, {transform_indices = @transform_10, window_bounds = array<i64: 8, 32>}]} {
    %c0 = arith.constant 0 : index
    %c0_0 = arith.constant 0 : index
    %0 = vector.load %arg1[%c0, %c0_0] : memref<8x32xf32, #tpu.memory_space<vmem>>, vector<8x32xf32>
    %c0_1 = arith.constant 0 : index
    %c0_2 = arith.constant 0 : index
    %1 = vector.load %arg2[%c0_1, %c0_2] : memref<32x64xf32, #tpu.memory_space<vmem>>, vector<32x64xf32>
    %cst = arith.constant dense<0.000000e+00> : vector<8x64xf32>
    %2 = tpu.matmul %0, %1, %cst {dimension_numbers = #tpu.dot_dimension_numbers<[1], [0], [0], [1], [0, 0, 1, 1], [], []>} : vector<8x32xf32>, vector<32x64xf32>, vector<8x64xf32> -> vector<8x64xf32>
    %c0_3 = arith.constant 0 : index
    %c0_4 = arith.constant 0 : index
    %3 = vector.load %arg3[%c0_3, %c0_4] : memref<1x64xf32, #tpu.memory_space<vmem>>, vector<1x64xf32>
    %4 = vector.broadcast %3 : vector<1x64xf32> to vector<8x64xf32>
    %5 = arith.addf %2, %4 : vector<8x64xf32>
    %cst_5 = arith.constant 0.000000e+00 : f32
    %6 = vector.broadcast %cst_5 : f32 to vector<8x64xf32>
    %7 = arith.maximumf %5, %6 : vector<8x64xf32>
    %c0_6 = arith.constant 0 : index
    %c0_7 = arith.constant 0 : index
    %8 = vector.load %arg4[%c0_6, %c0_7] : memref<64x64xf32, #tpu.memory_space<vmem>>, vector<64x64xf32>
    %cst_8 = arith.constant dense<0.000000e+00> : vector<8x64xf32>
    %9 = tpu.matmul %7, %8, %cst_8 {dimension_numbers = #tpu.dot_dimension_numbers<[1], [0], [0], [1], [0, 0, 1, 1], [], []>} : vector<8x64xf32>, vector<64x64xf32>, vector<8x64xf32> -> vector<8x64xf32>
    %c0_9 = arith.constant 0 : index
    %c0_10 = arith.constant 0 : index
    %10 = vector.load %arg5[%c0_9, %c0_10] : memref<1x64xf32, #tpu.memory_space<vmem>>, vector<1x64xf32>
    %11 = vector.broadcast %10 : vector<1x64xf32> to vector<8x64xf32>
    %12 = arith.addf %9, %11 : vector<8x64xf32>
    %cst_11 = arith.constant 0.000000e+00 : f32
    %13 = vector.broadcast %cst_11 : f32 to vector<8x64xf32>
    %14 = arith.maximumf %12, %13 : vector<8x64xf32>
    %c0_12 = arith.constant 0 : index
    %c0_13 = arith.constant 0 : index
    %15 = vector.load %arg6[%c0_12, %c0_13] : memref<64x32xf32, #tpu.memory_space<vmem>>, vector<64x32xf32>
    %cst_14 = arith.constant dense<0.000000e+00> : vector<8x32xf32>
    %16 = tpu.matmul %14, %15, %cst_14 {dimension_numbers = #tpu.dot_dimension_numbers<[1], [0], [0], [1], [0, 0, 1, 1], [], []>} : vector<8x64xf32>, vector<64x32xf32>, vector<8x32xf32> -> vector<8x32xf32>
    %c0_15 = arith.constant 0 : index
    %c0_16 = arith.constant 0 : index
    %17 = vector.load %arg7[%c0_15, %c0_16] : memref<1x32xf32, #tpu.memory_space<vmem>>, vector<1x32xf32>
    %18 = vector.broadcast %17 : vector<1x32xf32> to vector<8x32xf32>
    %19 = arith.addf %16, %18 : vector<8x32xf32>
    %cst_17 = arith.constant 0.000000e+00 : f32
    %20 = vector.broadcast %cst_17 : f32 to vector<8x32xf32>
    %21 = arith.maximumf %19, %20 : vector<8x32xf32>
    %c0_18 = arith.constant 0 : index
    %c0_19 = arith.constant 0 : index
    %22 = vector.load %arg10[%c0_18, %c0_19] : memref<8x32xf32, #tpu.memory_space<vmem>>, vector<8x32xf32>
    tpu.vector_store %arg10[%c0_18, %c0_19], %21 {strides = array<i32>} : memref<8x32xf32, #tpu.memory_space<vmem>>, vector<8x32xf32>,
    %c0_20 = arith.constant 0 : index
    %c0_21 = arith.constant 0 : index
    %23 = vector.load %arg8[%c0_20, %c0_21] : memref<64x32xf32, #tpu.memory_space<vmem>>, vector<64x32xf32>
    %cst_22 = arith.constant dense<0.000000e+00> : vector<8x32xf32>
    %24 = tpu.matmul %14, %23, %cst_22 {dimension_numbers = #tpu.dot_dimension_numbers<[1], [0], [0], [1], [0, 0, 1, 1], [], []>} : vector<8x64xf32>, vector<64x32xf32>, vector<8x32xf32> -> vector<8x32xf32>
    %c0_23 = arith.constant 0 : index
    %c0_24 = arith.constant 0 : index
    %25 = vector.load %arg9[%c0_23, %c0_24] : memref<1x32xf32, #tpu.memory_space<vmem>>, vector<1x32xf32>
    %26 = vector.broadcast %25 : vector<1x32xf32> to vector<8x32xf32>
    %27 = arith.addf %24, %26 : vector<8x32xf32>
    %cst_25 = arith.constant 0.000000e+00 : f32
    %28 = vector.broadcast %cst_25 : f32 to vector<8x32xf32>
    %29 = arith.maximumf %27, %28 : vector<8x32xf32>
    %c0_26 = arith.constant 0 : index
    %c0_27 = arith.constant 0 : index
    %30 = vector.load %arg11[%c0_26, %c0_27] : memref<8x32xf32, #tpu.memory_space<vmem>>, vector<8x32xf32>
    tpu.vector_store %arg11[%c0_26, %c0_27], %29 {strides = array<i32>} : memref<8x32xf32, #tpu.memory_space<vmem>>, vector<8x32xf32>,
    return
  }
  func.func @transform_0(%arg0: i32) -> (i32, i32) {
    %c0_i32 = arith.constant 0 : i32
    %c0_i32_0 = arith.constant 0 : i32
    return %arg0, %c0_i32 : i32, i32
  }
  func.func @transform_1(%arg0: i32) -> (i32, i32) {
    %c0_i32 = arith.constant 0 : i32
    %c0_i32_0 = arith.constant 0 : i32
    %c0_i32_1 = arith.constant 0 : i32
    return %c0_i32, %c0_i32_0 : i32, i32
  }
  func.func @transform_2(%arg0: i32) -> (i32, i32) {
    %c0_i32 = arith.constant 0 : i32
    %c0_i32_0 = arith.constant 0 : i32
    %c0_i32_1 = arith.constant 0 : i32
    return %c0_i32, %c0_i32_0 : i32, i32
  }
  func.func @transform_3(%arg0: i32) -> (i32, i32) {
    %c0_i32 = arith.constant 0 : i32
    %c0_i32_0 = arith.constant 0 : i32
    %c0_i32_1 = arith.constant 0 : i32
    return %c0_i32, %c0_i32_0 : i32, i32
  }
  func.func @transform_4(%arg0: i32) -> (i32, i32) {
    %c0_i32 = arith.constant 0 : i32
    %c0_i32_0 = arith.constant 0 : i32
    %c0_i32_1 = arith.constant 0 : i32
    return %c0_i32, %c0_i32_0 : i32, i32
  }
  func.func @transform_5(%arg0: i32) -> (i32, i32) {
    %c0_i32 = arith.constant 0 : i32
    %c0_i32_0 = arith.constant 0 : i32
    %c0_i32_1 = arith.constant 0 : i32
    return %c0_i32, %c0_i32_0 : i32, i32
  }
  func.func @transform_6(%arg0: i32) -> (i32, i32) {
    %c0_i32 = arith.constant 0 : i32
    %c0_i32_0 = arith.constant 0 : i32
    %c0_i32_1 = arith.constant 0 : i32
    return %c0_i32, %c0_i32_0 : i32, i32
  }
  func.func @transform_7(%arg0: i32) -> (i32, i32) {
    %c0_i32 = arith.constant 0 : i32
    %c0_i32_0 = arith.constant 0 : i32
    %c0_i32_1 = arith.constant 0 : i32
    return %c0_i32, %c0_i32_0 : i32, i32
  }
  func.func @transform_8(%arg0: i32) -> (i32, i32) {
    %c0_i32 = arith.constant 0 : i32
    %c0_i32_0 = arith.constant 0 : i32
    %c0_i32_1 = arith.constant 0 : i32
    return %c0_i32, %c0_i32_0 : i32, i32
  }
  func.func @transform_9(%arg0: i32) -> (i32, i32) {
    %c0_i32 = arith.constant 0 : i32
    %c0_i32_0 = arith.constant 0 : i32
    return %arg0, %c0_i32 : i32, i32
  }
  func.func @transform_10(%arg0: i32) -> (i32, i32) {
    %c0_i32 = arith.constant 0 : i32
    %c0_i32_0 = arith.constant 0 : i32
    return %arg0, %c0_i32 : i32, i32
  }
}

</mosaic_0001>

<bundles_post_ra>
// kernel: mlp_arena2d_forward.1
= control target key start
LH: loop header
LB: loop body
LE: loop exit
PB: predicated region body
PF: predicated region fallthrough
CT: control target
= control target key end

     0   :  { %16 = vsyncpa [#allocation3], 0  ;;  %s788_s0 = inlined_call_operand.vmem [shape: f32[2,32], index: 0, kind: input, shape index: {}]   ;;  %s789_s1 = inlined_call_operand.vmem [shape: f32[32,64], index: 1, kind: input, shape index: {}]   ;;  %s790_s2 = inlined_call_operand.vmem [shape: f32[1,64], index: 2, kind: input, shape index: {}]   ;;  %s791_s3 = inlined_call_operand.vmem [shape: f32[64,64], index: 3, kind: input, shape index: {}]   ;;  %s792_s4 = inlined_call_operand.vmem [shape: f32[1,64], index: 4, kind: input, shape index: {}]   ;;  %s793_s5 = inlined_call_operand.vmem [shape: f32[64,32], index: 5, kind: input, shape index: {}]   ;;  %s794_s6 = inlined_call_operand.vmem [shape: f32[1,32], index: 6, kind: input, shape index: {}]   ;;  %s795_s7 = inlined_call_operand.vmem [shape: f32[64,32], index: 7, kind: input, shape index: {}]   ;;  %s796_s8 = inlined_call_operand.vmem [shape: f32[1,32], index: 8, kind: input, shape index: {}]   ;;  %s797_s9 = inlined_call_operand.hbm [shape: f32[2,32], index: 9, kind: output, shape index: {0}]   ;;  %s798_s10 = inlined_call_operand.hbm [shape: f32[2,32], index: 10, kind: output, shape index: {1}]  }
   0x1   :  { %17 = vsyncpa [#allocation5], 0  ;;  %v40_v0 = vld [vmem:[%s789_s1 + $0x18] sm:$0xff]  ;;  %v580_v1 = vmov 0.0   ;;  %v39_v2 = vld [vmem:[%s789_s1 + $0x10] sm:$0xff]  ;;  %vm581_vm0 = vmmov 0  }
   0x2   :  { %462 = vmatprep.subr.mxu0 %v580_v1  ;;  %470 = vmatprep.mubr.msk.f32.mxu0 %vm581_vm0, %v580_v1  ;;  %v130_v3 = vld [vmem:[%s791_s3 + $0x38] sm:$0xff]  ;;  %v129_v4 = vld [vmem:[%s791_s3 + $0x30] sm:$0xff]  ;;  %v38_v5 = vld [vmem:[%s789_s1 + $0x8] sm:$0xff]  ;;  %vm48_vm1 = vcmask 261120   ;;  %vm138_vm2 = vcmask 523264  }
   0x3   :  { %463 = vmatpush3.msra.mxu0 %v40_v0  ;;  %473 = vmatprep.subr.mxu1 %v580_v1  ;;  %v128_v6 = vld [vmem:[%s791_s3 + $0x28] sm:$0xff]  ;;  %v37_v7 = vld [vmem:[%s789_s1] sm:$0xff]  ;;  %v126_v10 = vld [vmem:[%s791_s3 + $0x18] sm:$0xff] }
   0x4   :  { %464 = vmatprep.subr.mxu0 %v580_v1  ;;  %474 = vmatpush3.msra.mxu1 %v130_v3  ;;  %v36_v8 = vld [vmem:[%s788_s0] sm:$0xff]  ;;  %v125_v11 = vld [vmem:[%s791_s3 + $0x10] sm:$0xff]  ;;  %v124_v12 = vld [vmem:[%s791_s3 + $0x8] sm:$0xff] }
   0x5   :  { %465 = vmatpush3.msra.mxu0 %v39_v2  ;;  %475 = vmatprep.subr.mxu1 %v580_v1  ;;  %v127_v9 = vld [vmem:[%s791_s3 + $0x20] sm:$0xff]  ;;  %v220_v14 = vld [vmem:[%s793_s5 + $0x38] sm:$0xff]  ;;  %v219_v15 = vld [vmem:[%s793_s5 + $0x30] sm:$0xff] }
   0x6   :  { %466 = vmatprep.subr.mxu0 %v580_v1  ;;  %476 = vmatpush3.msra.mxu1 %v129_v4  ;;  %v123_v13 = vld [vmem:[%s791_s3] sm:$0xff]  ;;  %v218_v16 = vld [vmem:[%s793_s5 + $0x28] sm:$0xff]  ;;  %v216_v18 = vld [vmem:[%s793_s5 + $0x18] sm:$0xff] }
   0x7   :  { %467 = vmatpush3.msra.mxu0 %v38_v5  ;;  %477 = vmatprep.subr.mxu1 %v580_v1  ;;  %v217_v17 = vld [vmem:[%s793_s5 + $0x20] sm:$0xff]  ;;  %v310_v24 = vld [vmem:[%s795_s7 + $0x38] sm:$0xff]  ;;  %v309_v25 = vld [vmem:[%s795_s7 + $0x30] sm:$0xff] }
   0x8   :  { %468 = vmatprep.subr.mxu0 %v580_v1  ;;  %478 = vmatpush3.msra.mxu1 %v128_v6  ;;  %v422_v19 = vld [vmem:[%s790_s2] ss:$0 sm:$0xff]  ;;  %v308_v26 = vld [vmem:[%s795_s7 + $0x28] sm:$0xff]  ;;  %v306_v28 = vld [vmem:[%s795_s7 + $0x18] sm:$0xff] }
   0x9   :  { %469 = vmatpush3.msra.mxu0 %v37_v7  ;;  %479 = vmatprep.subr.mxu1 %v580_v1  ;;  %v307_v27 = vld [vmem:[%s795_s7 + $0x20] sm:$0xff]  ;;  %v215_v29 = vld [vmem:[%s793_s5 + $0x10] sm:$0xff]  ;;  %v214_v31 = vld [vmem:[%s793_s5 + $0x8] sm:$0xff] }
   0xa   :  { %471 = vmatmul.mubr.msk.f32.vlgmr.msra.gmra.mxu0 %vm48_vm1, %v36_v8  ;;  %480 = vmatpush3.msra.mxu1 %v127_v9  ;;  %v305_v30 = vld [vmem:[%s795_s7 + $0x10] sm:$0xff]  ;;  %v304_v32 = vld [vmem:[%s795_s7 + $0x8] sm:$0xff]  ;;  %v213_v33 = vld [vmem:[%s793_s5] sm:$0xff] }
   0xb   :  { %481 = vmatprep.subr.mxu1 %v580_v1  ;;  %489 = vmatprep.mubr.msk.f32.mxu1 %vm581_vm0, %v580_v1  ;;  %v303_v34 = vld [vmem:[%s795_s7] sm:$0xff] }
   0xc   :  { %482 = vmatpush3.msra.mxu1 %v126_v10  ;;  %492 = vmatprep.subr.mxu0 %v580_v1  ;;  %v424_v35 = vld [vmem:[%s792_s4] ss:$0 sm:$0xff] }
   0xd   :  { %483 = vmatprep.subr.mxu1 %v580_v1  ;;  %508 = vmatprep.mubr.msk.f32.mxu0 %vm581_vm0, %v580_v1  ;;  %v426_v40 = vld [vmem:[%s794_s6] ss:$0 sm:$0xff] }
   0xe   :  { %484 = vmatpush3.msra.mxu1 %v125_v11  ;;  %493 = vmatpush3.msra.mxu0 %v220_v14  ;;  %v428_v41 = vld [vmem:[%s796_s8] ss:$0 sm:$0xff] }
   0xf   :  { %485 = vmatprep.subr.mxu1 %v580_v1  ;;  %494 = vmatprep.subr.mxu0 %v580_v1 }
  0x10   :  { %486 = vmatpush3.msra.mxu1 %v124_v12  ;;  %495 = vmatpush3.msra.mxu0 %v219_v15 }
  0x11   :  { %487 = vmatprep.subr.mxu1 %v580_v1  ;;  %496 = vmatprep.subr.mxu0 %v580_v1 }
  0x12   :  { %488 = vmatpush3.msra.mxu1 %v123_v13  ;;  %497 = vmatpush3.msra.mxu0 %v218_v16 }
  0x13   :  { %511 = vmatprep.subr.mxu1 %v580_v1  ;;  %498 = vmatprep.subr.mxu0 %v580_v1 }
  0x14   :  { %499 = vmatpush3.msra.mxu0 %v217_v17 }
  0x15   :  { %500 = vmatprep.subr.mxu0 %v580_v1 }
  0x16   :  { %501 = vmatpush3.msra.mxu0 %v216_v18 }
  0x17   :  { %502 = vmatprep.subr.mxu0 %v580_v1 }
  0x18   :  { %503 = vmatpush3.msra.mxu0 %v215_v29 }
  0x19   :  { %504 = vmatprep.subr.mxu0 %v580_v1 }
  0x1a   :  { %505 = vmatpush3.msra.mxu0 %v214_v31 }
  0x1b   :  { %506 = vmatprep.subr.mxu0 %v580_v1 }
  0x1c   :  { %507 = vmatpush3.msra.mxu0 %v213_v33 }
  0xca   :  { %v118_v20 = vpop.f32.mrf.mxu0 }
  0xcb   :  { %v119_v21 = vadd.f32 %v422_v19, %v118_v20 }
  0xcc   :  { %v472_v22 = vpop.f32.mrf.mxu0 }
  0xcd   :  { %v122_v23 = vmax.f32 %v119_v21, 0.0 }
  0xcf   :  { %490 = vmatmul.mubr.msk.f32.vlgmr.msra.gmra.mxu1 %vm138_vm2, %v122_v23 }
  0xd0   :  { %512 = vmatpush3.msra.mxu1 %v310_v24  ;;  %527 = vmatprep.mubr.msk.f32.mxu1 %vm581_vm0, %v580_v1 }
  0xd1   :  { %513 = vmatprep.subr.mxu1 %v580_v1 }
  0xd2   :  { %514 = vmatpush3.msra.mxu1 %v309_v25 }
  0xd3   :  { %515 = vmatprep.subr.mxu1 %v580_v1 }
  0xd4   :  { %516 = vmatpush3.msra.mxu1 %v308_v26 }
  0xd5   :  { %517 = vmatprep.subr.mxu1 %v580_v1 }
  0xd6   :  { %518 = vmatpush3.msra.mxu1 %v307_v27 }
  0xd7   :  { %519 = vmatprep.subr.mxu1 %v580_v1 }
  0xd8   :  { %520 = vmatpush3.msra.mxu1 %v306_v28 }
  0xd9   :  { %521 = vmatprep.subr.mxu1 %v580_v1 }
  0xda   :  { %522 = vmatpush3.msra.mxu1 %v305_v30 }
  0xdb   :  { %523 = vmatprep.subr.mxu1 %v580_v1 }
  0xdc   :  { %524 = vmatpush3.msra.mxu1 %v304_v32 }
  0xdd   :  { %525 = vmatprep.subr.mxu1 %v580_v1 }
  0xde   :  { %526 = vmatpush3.msra.mxu1 %v303_v34 }
 0x18f   :  { %v208_v36 = vpop.f32.mrf.mxu1 }
 0x190   :  { %v209_v37 = vadd.f32 %v424_v35, %v208_v36 }
 0x191   :  { %v491_v38 = vpop.f32.mrf.mxu1 }
 0x192   :  { %v212_v39 = vmax.f32 %v209_v37, 0.0 }
 0x194   :  { %509 = vmatmul.mubr.msk.f32.vlgmr.msra.gmra.mxu0 %vm138_vm2, %v212_v39  ;;  %528 = vmatmul.mubr.msk.f32.vlgmr.msra.gmra.mxu1 %vm138_vm2, %v212_v39 }
 0x254   :  { %v297_v42 = vpop.f32.mrf.mxu0  ;;  %v384_v43 = vpop.f32.mrf.mxu1 }
 0x255   :  { %v298_v44 = vadd.f32 %v426_v40, %v297_v42  ;;  %v385_v45 = vadd.f32 %v428_v41, %v384_v43 }
 0x256   :  { %v510_v46 = vpop.f32.mrf.mxu0  ;;  %v529_v47 = vpop.f32.mrf.mxu1 }
 0x257   :  { %v301_v48 = vmax.f32 %v298_v44, 0.0  ;;  %v388_v49 = vmax.f32 %v385_v45, 0.0 }
 0x259   :  { %302 = vst.msk [vmem:[#allocation2] sm:$0xff] %vm48_vm1, %v301_v48  ;;  %389 = vst.msk [vmem:[#allocation4] sm:$0xff] %vm48_vm1, %v388_v49 }
 0x25a   :  { %394 = vsyncadd [#allocation3], 96  ;;  %s582_s4 = smov [#allocation2]  }
 0x25b   :  { %s395_s30 = sshll.u32 %s582_s4, 4  ;;  %s396_s30 = int_to_ptr.vmem [resolvable:$true] %s395_s30 }
 0x25c   :  { %s536_s6 = scalar_lea.vmem %s396_s30, 32  ;;  %s540_s1 = scalar_lea.vmem %s396_s30, 128 }
 0x25d   :  { %p537_p0 = scmp.ne.s32.totalorder %s396_s30, %s536_s6  ;;  %p541_p1 = scmp.lt.s32.totalorder %s396_s30, %s396_s30 }
 0x25e   :  { %p542_p2 = scmp.lt.s32.totalorder %s540_s1, %s536_s6 }
 0x260   :  { %p543_p3 = por %p542_p2, %p541_p1 }
 0x262   :  { %p544_p4 = pnand %p543_p3, %p537_p0 }
 0x264   :  { %547 = shalt.err (!%p544_p4)
}
 0x265   :  { %s583_s8 = smov 32   ;;  %s584_s2 = smov 2  }
 0x266   :  { %401 = dma.vmem_to_hbm [thread:$0]  %s396_s30, 32, %s797_s9, [#allocation3], %s583_s8, %s583_s8, %s584_s2  }
 0x267   :  { %406 = vsyncadd [#allocation5], 96  ;;  %s585_s12 = smov [#allocation4]  }
 0x268   :  { %s407_s13 = sshll.u32 %s585_s12, 4  ;;  %s408_s13 = int_to_ptr.vmem [resolvable:$true] %s407_s13 }
 0x269   :  { %s556_s14 = scalar_lea.vmem %s408_s13, 32  ;;  %s560_s15 = scalar_lea.vmem %s408_s13, 128 }
 0x26a   :  { %p557_p5 = scmp.ne.s32.totalorder %s408_s13, %s556_s14  ;;  %p561_p6 = scmp.lt.s32.totalorder %s408_s13, %s408_s13 }
 0x26b   :  { %p562_p7 = scmp.lt.s32.totalorder %s560_s15, %s556_s14 }
 0x26d   :  { %p563_p8 = por %p562_p7, %p561_p6 }
 0x26f   :  { %p564_p9 = pnand %p563_p8, %p557_p5 }
 0x271   :  { %567 = shalt.err (!%p564_p9)
}
 0x272   :  { %413 = dma.vmem_to_hbm [thread:$0]  %s408_s13, 32, %s798_s10, [#allocation5], %s583_s8, %s583_s8, %s584_s2  }
 0x273   :  { %576 = dma.done.wait [#allocation3], 128  }
 0x274   :  { %577 = vsyncadd [#allocation3], 4294967168 }
 0x275   :  { %578 = dma.done.wait [#allocation5], 128  }
 0x276   :  { %579 = vsyncadd [#allocation5], 4294967168 }
 0x277   :  { %420 = vsyncpa [#allocation3], 1 }
 0x278   :  { %421 = vsyncpa [#allocation5], 1 }

</bundles_post_ra>
